<compile_context>
chip_gen: v5e
topology: v5e:2x2
jax: 0.10.0
libtpu: 0.0.40
codegen_flags: <defaults>
</compile_context>

<pallas_src>
import jax
import jax.numpy as jnp
from jax.experimental import pallas as pl
from jax.experimental.pallas import tpu as pltpu


def _round_up(x, m):
    return ((x + m - 1) // m) * m


def beta_actor_kernel(x_ref, w1_ref, b1_ref, w2_ref, b2_ref, wab_ref, bab_ref,
                      out_ref):
    # Layer 1: Linear + tanh  (bf16 MXU inputs, f32 accumulation)
    x = x_ref[...].astype(jnp.bfloat16)
    h = jnp.dot(x, w1_ref[...], preferred_element_type=jnp.float32) + b1_ref[...]
    h = jnp.tanh(h).astype(jnp.bfloat16)

    # Layer 2: Linear + tanh
    h = jnp.dot(h, w2_ref[...], preferred_element_type=jnp.float32) + b2_ref[...]
    h = jnp.tanh(h).astype(jnp.bfloat16)

    # Fused alpha/beta heads: single lane-dense matmul -> (TB, 2*A_p)
    z = jnp.dot(h, wab_ref[...], preferred_element_type=jnp.float32) + bab_ref[...]

    # softplus(z) + 1, numerically stable:  max(z, 0) + log(1 + exp(-|z|)) + 1
    sp = jnp.maximum(z, 0.0) + jnp.log(1.0 + jnp.exp(-jnp.abs(z)))
    out_ref[...] = (sp + 1.0).astype(out_ref.dtype)


def beta_actor_forward(state, params):
    """state: (B, state_dim) f32. Returns (alpha, beta), each (B, action_dim)."""
    B, state_dim = state.shape
    H = params["w1"].shape[1]
    A = params["wa"].shape[1]

    LANE = 128
    S_p = _round_up(state_dim, LANE)
    H_p = _round_up(H, LANE)
    A_p = _round_up(A, LANE)

    # Batch tile: 8-aligned, large enough to amortize per-step overhead but
    # small enough for v7x's tighter VMEM budget.
    TB = min(256, _round_up(B, 8))
    B_p = _round_up(B, TB)
    n_blocks = B_p // TB

    f32, bf16 = jnp.float32, jnp.bfloat16

    # Zero-pad inputs / weights to lane-dense shapes; cast weights to bf16.
    x_p = jnp.pad(state.astype(f32), ((0, B_p - B), (0, S_p - state_dim)))
    w1 = jnp.pad(params["w1"], ((0, S_p - state_dim), (0, H_p - H))).astype(bf16)
    b1 = jnp.pad(params["b1"], ((0, 0), (0, H_p - H))).astype(f32)
    w2 = jnp.pad(params["w2"], ((0, H_p - H), (0, H_p - H))).astype(bf16)
    b2 = jnp.pad(params["b2"], ((0, 0), (0, H_p - H))).astype(f32)
    wa = jnp.pad(params["wa"], ((0, H_p - H), (0, A_p - A)))
    wb = jnp.pad(params["wb"], ((0, H_p - H), (0, A_p - A)))
    wab = jnp.concatenate([wa, wb], axis=1).astype(bf16)          # (H_p, 2*A_p)
    ba = jnp.pad(params["ba"], ((0, 0), (0, A_p - A)))
    bb = jnp.pad(params["bb"], ((0, 0), (0, A_p - A)))
    bab = jnp.concatenate([ba, bb], axis=1).astype(f32)           # (1, 2*A_p)

    flops = 2 * B_p * (S_p * H_p + H_p * H_p + H_p * 2 * A_p)
    transcendentals = B_p * (2 * H_p + 4 * A_p)                   # tanh, exp, log
    bytes_accessed = (4 * B_p * S_p + 4 * B_p * 2 * A_p
                      + 2 * (S_p * H_p + H_p * H_p + H_p * 2 * A_p)
                      + 4 * (2 * H_p + 2 * A_p))

    out = pl.pallas_call(
        beta_actor_kernel,
        out_shape=jax.ShapeDtypeStruct((B_p, 2 * A_p), f32),
        grid_spec=pltpu.PrefetchScalarGridSpec(
            num_scalar_prefetch=0,
            grid=(n_blocks,),
            in_specs=[
                pl.BlockSpec((TB, S_p), lambda i: (i, 0)),        # batch-tiled input
                pl.BlockSpec((S_p, H_p), lambda i: (0, 0)),       # weights: VMEM-resident
                pl.BlockSpec((1, H_p), lambda i: (0, 0)),
                pl.BlockSpec((H_p, H_p), lambda i: (0, 0)),
                pl.BlockSpec((1, H_p), lambda i: (0, 0)),
                pl.BlockSpec((H_p, 2 * A_p), lambda i: (0, 0)),
                pl.BlockSpec((1, 2 * A_p), lambda i: (0, 0)),
            ],
            out_specs=pl.BlockSpec((TB, 2 * A_p), lambda i: (i, 0)),
        ),
        compiler_params=pltpu.CompilerParams(
            dimension_semantics=("parallel",)),
        cost_estimate=pl.CostEstimate(
            flops=flops,
            transcendentals=transcendentals,
            bytes_accessed=bytes_accessed),
    )(x_p, w1, b1, w2, b2, wab, bab)

    alpha = out[:B, :A]
    beta = out[:B, A_p:A_p + A]
    return alpha, beta


def init_params(key, state_dim, net_width, action_dim):
    """nn.Linear-style uniform fan-in init; weights stored as (in, out)."""
    def linear(k, fan_in, fan_out):
        kw, kb = jax.random.split(k)
        bound = 1.0 / (fan_in ** 0.5)
        w = jax.random.uniform(kw, (fan_in, fan_out), jnp.float32, -bound, bound)
        b = jax.random.uniform(kb, (1, fan_out), jnp.float32, -bound, bound)
        return w, b

    k1, k2, k3, k4 = jax.random.split(key, 4)
    w1, b1 = linear(k1, state_dim, net_width)
    w2, b2 = linear(k2, net_width, net_width)
    wa, ba = linear(k3, net_width, action_dim)
    wb, bb = linear(k4, net_width, action_dim)
    return dict(w1=w1, b1=b1, w2=w2, b2=b2, wa=wa, ba=ba, wb=wb, bb=bb)


def reference_forward(state, params):
    """Pure-JAX reference with the same bf16-input / f32-accumulate contract."""
    bf16 = jnp.bfloat16
    x = state.astype(bf16)
    h = jnp.tanh(jnp.dot(x, params["w1"].astype(bf16),
                         preferred_element_type=jnp.float32) + params["b1"])
    h = jnp.tanh(jnp.dot(h.astype(bf16), params["w2"].astype(bf16),
                         preferred_element_type=jnp.float32) + params["b2"])
    hb = h.astype(bf16)
    za = jnp.dot(hb, params["wa"].astype(bf16),
                 preferred_element_type=jnp.float32) + params["ba"]
    zb = jnp.dot(hb, params["wb"].astype(bf16),
                 preferred_element_type=jnp.float32) + params["bb"]
    alpha = jax.nn.softplus(za) + 1.0
    beta = jax.nn.softplus(zb) + 1.0
    return alpha, beta


if __name__ == "__main__":
    batch = 8
    state_dim = 32
    net_width = 64
    action_dim = 8

    key = jax.random.PRNGKey(0)
    k_params, k_state = jax.random.split(key)

    params = init_params(k_params, state_dim, net_width, action_dim)
    state = jax.random.normal(k_state, (batch, state_dim), jnp.float32)

    fwd = jax.jit(beta_actor_forward)
    alpha, beta = jax.block_until_ready(fwd(state, params))

    ref_alpha, ref_beta = reference_forward(state, params)

    assert alpha.shape == (batch, action_dim)
    assert beta.shape == (batch, action_dim)
    # Beta params must be strictly > 1 (softplus > 0).
    assert bool(jnp.all(alpha > 1.0)) and bool(jnp.all(beta > 1.0))
    # bf16 MXU inputs with f32 accumulation -> tolerance relaxed vs pure-f32.
    assert jnp.allclose(alpha, ref_alpha, atol=2e-3, rtol=2e-3)
    assert jnp.allclose(beta, ref_beta, atol=2e-3, rtol=2e-3)

    # TODO(synk): get_dist (torch.distributions.Beta) and sampling are
    # distribution objects, not tensor ops; only forward() is kernelized.
    print("KERNEL_OK")
</pallas_src>

<mosaic_0001>
module attributes {stable_mosaic.version = 11 : i64} {
  func.func @beta_actor_kernel(%arg0: i32, %arg1: memref<8x128xf32, #tpu.memory_space<vmem>>, %arg2: memref<128x128xbf16, #tpu.memory_space<vmem>>, %arg3: memref<1x128xf32, #tpu.memory_space<vmem>>, %arg4: memref<128x128xbf16, #tpu.memory_space<vmem>>, %arg5: memref<1x128xf32, #tpu.memory_space<vmem>>, %arg6: memref<128x256xbf16, #tpu.memory_space<vmem>>, %arg7: memref<1x256xf32, #tpu.memory_space<vmem>>, %arg8: memref<8x256xf32, #tpu.memory_space<vmem>>) attributes {dimension_semantics = [#tpu.dimension_semantics<parallel>], iteration_bounds = array<i64: 1>, scalar_prefetch = 0 : i64, scratch_operands = 0 : i64, tpu.core_type = #tpu.core_type<tc>, window_params = [{transform_indices = @transform_0, window_bounds = array<i64: 8, 128>}, {pipeline_mode = #tpu.pipeline_mode<synchronous>, transform_indices = @transform_1, window_bounds = array<i64: 128, 128>}, {pipeline_mode = #tpu.pipeline_mode<synchronous>, transform_indices = @transform_2, window_bounds = array<i64: 1, 128>}, {pipeline_mode = #tpu.pipeline_mode<synchronous>, transform_indices = @transform_3, window_bounds = array<i64: 128, 128>}, {pipeline_mode = #tpu.pipeline_mode<synchronous>, transform_indices = @transform_4, window_bounds = array<i64: 1, 128>}, {pipeline_mode = #tpu.pipeline_mode<synchronous>, transform_indices = @transform_5, window_bounds = array<i64: 128, 256>}, {pipeline_mode = #tpu.pipeline_mode<synchronous>, transform_indices = @transform_6, window_bounds = array<i64: 1, 256>}, {transform_indices = @transform_7, window_bounds = array<i64: 8, 256>}]} {
    %c0 = arith.constant 0 : index
    %c0_0 = arith.constant 0 : index
    %0 = vector.load %arg1[%c0, %c0_0] : memref<8x128xf32, #tpu.memory_space<vmem>>, vector<8x128xf32>
    %1 = arith.truncf %0 : vector<8x128xf32> to vector<8x128xbf16>
    %c0_1 = arith.constant 0 : index
    %c0_2 = arith.constant 0 : index
    %2 = vector.load %arg2[%c0_1, %c0_2] : memref<128x128xbf16, #tpu.memory_space<vmem>>, vector<128x128xbf16>
    %cst = arith.constant dense<0.000000e+00> : vector<8x128xf32>
    %3 = tpu.matmul %1, %2, %cst {dimension_numbers = #tpu.dot_dimension_numbers<[1], [0], [0], [1], [0, 0, 1, 1], [], []>} : vector<8x128xbf16>, vector<128x128xbf16>, vector<8x128xf32> -> vector<8x128xf32>
    %c0_3 = arith.constant 0 : index
    %c0_4 = arith.constant 0 : index
    %4 = vector.load %arg3[%c0_3, %c0_4] : memref<1x128xf32, #tpu.memory_space<vmem>>, vector<1x128xf32>
    %5 = vector.broadcast %4 : vector<1x128xf32> to vector<8x128xf32>
    %6 = arith.addf %3, %5 : vector<8x128xf32>
    %7 = math.tanh %6 : vector<8x128xf32>
    %8 = arith.truncf %7 : vector<8x128xf32> to vector<8x128xbf16>
    %c0_5 = arith.constant 0 : index
    %c0_6 = arith.constant 0 : index
    %9 = vector.load %arg4[%c0_5, %c0_6] : memref<128x128xbf16, #tpu.memory_space<vmem>>, vector<128x128xbf16>
    %cst_7 = arith.constant dense<0.000000e+00> : vector<8x128xf32>
    %10 = tpu.matmul %8, %9, %cst_7 {dimension_numbers = #tpu.dot_dimension_numbers<[1], [0], [0], [1], [0, 0, 1, 1], [], []>} : vector<8x128xbf16>, vector<128x128xbf16>, vector<8x128xf32> -> vector<8x128xf32>
    %c0_8 = arith.constant 0 : index
    %c0_9 = arith.constant 0 : index
    %11 = vector.load %arg5[%c0_8, %c0_9] : memref<1x128xf32, #tpu.memory_space<vmem>>, vector<1x128xf32>
    %12 = vector.broadcast %11 : vector<1x128xf32> to vector<8x128xf32>
    %13 = arith.addf %10, %12 : vector<8x128xf32>
    %14 = math.tanh %13 : vector<8x128xf32>
    %15 = arith.truncf %14 : vector<8x128xf32> to vector<8x128xbf16>
    %c0_10 = arith.constant 0 : index
    %c0_11 = arith.constant 0 : index
    %16 = vector.load %arg6[%c0_10, %c0_11] : memref<128x256xbf16, #tpu.memory_space<vmem>>, vector<128x256xbf16>
    %cst_12 = arith.constant dense<0.000000e+00> : vector<8x256xf32>
    %17 = tpu.matmul %15, %16, %cst_12 {dimension_numbers = #tpu.dot_dimension_numbers<[1], [0], [0], [1], [0, 0, 1, 1], [], []>} : vector<8x128xbf16>, vector<128x256xbf16>, vector<8x256xf32> -> vector<8x256xf32>
    %c0_13 = arith.constant 0 : index
    %c0_14 = arith.constant 0 : index
    %18 = vector.load %arg7[%c0_13, %c0_14] : memref<1x256xf32, #tpu.memory_space<vmem>>, vector<1x256xf32>
    %19 = vector.broadcast %18 : vector<1x256xf32> to vector<8x256xf32>
    %20 = arith.addf %17, %19 : vector<8x256xf32>
    %cst_15 = arith.constant 0.000000e+00 : f32
    %21 = vector.broadcast %cst_15 : f32 to vector<8x256xf32>
    %22 = arith.maximumf %20, %21 : vector<8x256xf32>
    %23 = math.absf %20 : vector<8x256xf32>
    %cst_16 = arith.constant 0.000000e+00 : f32
    %24 = vector.broadcast %cst_16 : f32 to vector<8x256xf32>
    %25 = arith.subf %24, %23 : vector<8x256xf32>
    %26 = math.exp %25 : vector<8x256xf32>
    %cst_17 = arith.constant 1.000000e+00 : f32
    %27 = vector.broadcast %cst_17 : f32 to vector<8x256xf32>
    %28 = arith.addf %27, %26 : vector<8x256xf32>
    %29 = math.log %28 : vector<8x256xf32>
    %30 = arith.addf %22, %29 : vector<8x256xf32>
    %cst_18 = arith.constant 1.000000e+00 : f32
    %31 = vector.broadcast %cst_18 : f32 to vector<8x256xf32>
    %32 = arith.addf %30, %31 : vector<8x256xf32>
    %c0_19 = arith.constant 0 : index
    %c0_20 = arith.constant 0 : index
    %33 = vector.load %arg8[%c0_19, %c0_20] : memref<8x256xf32, #tpu.memory_space<vmem>>, vector<8x256xf32>
    tpu.vector_store %arg8[%c0_19, %c0_20], %32 {strides = array<i32>} : memref<8x256xf32, #tpu.memory_space<vmem>>, vector<8x256xf32>,
    return
  }
  func.func @transform_0(%arg0: i32) -> (i32, i32) {
    %c0_i32 = arith.constant 0 : i32
    %c0_i32_0 = arith.constant 0 : i32
    return %arg0, %c0_i32 : i32, i32
  }
  func.func @transform_1(%arg0: i32) -> (i32, i32) {
    %c0_i32 = arith.constant 0 : i32
    %c0_i32_0 = arith.constant 0 : i32
    %c0_i32_1 = arith.constant 0 : i32
    return %c0_i32, %c0_i32_0 : i32, i32
  }
  func.func @transform_2(%arg0: i32) -> (i32, i32) {
    %c0_i32 = arith.constant 0 : i32
    %c0_i32_0 = arith.constant 0 : i32
    %c0_i32_1 = arith.constant 0 : i32
    return %c0_i32, %c0_i32_0 : i32, i32
  }
  func.func @transform_3(%arg0: i32) -> (i32, i32) {
    %c0_i32 = arith.constant 0 : i32
    %c0_i32_0 = arith.constant 0 : i32
    %c0_i32_1 = arith.constant 0 : i32
    return %c0_i32, %c0_i32_0 : i32, i32
  }
  func.func @transform_4(%arg0: i32) -> (i32, i32) {
    %c0_i32 = arith.constant 0 : i32
    %c0_i32_0 = arith.constant 0 : i32
    %c0_i32_1 = arith.constant 0 : i32
    return %c0_i32, %c0_i32_0 : i32, i32
  }
  func.func @transform_5(%arg0: i32) -> (i32, i32) {
    %c0_i32 = arith.constant 0 : i32
    %c0_i32_0 = arith.constant 0 : i32
    %c0_i32_1 = arith.constant 0 : i32
    return %c0_i32, %c0_i32_0 : i32, i32
  }
  func.func @transform_6(%arg0: i32) -> (i32, i32) {
    %c0_i32 = arith.constant 0 : i32
    %c0_i32_0 = arith.constant 0 : i32
    %c0_i32_1 = arith.constant 0 : i32
    return %c0_i32, %c0_i32_0 : i32, i32
  }
  func.func @transform_7(%arg0: i32) -> (i32, i32) {
    %c0_i32 = arith.constant 0 : i32
    %c0_i32_0 = arith.constant 0 : i32
    return %arg0, %c0_i32 : i32, i32
  }
}

</mosaic_0001>

<bundles_post_ra>
// kernel: beta_actor_forward.1
= control target key start
LH: loop header
LB: loop body
LE: loop exit
PB: predicated region body
PF: predicated region fallthrough
CT: control target
= control target key end

     0   :  { %s724_s1 = inlined_call_operand.vmem [shape: bf16[128,128], index: 1, kind: input, shape index: {}]   ;;  %s725_s3 = inlined_call_operand.vmem [shape: bf16[128,128], index: 3, kind: input, shape index: {}]   ;;  %s726_s2 = inlined_call_operand.vmem [shape: f32[1,128], index: 2, kind: input, shape index: {}]   ;;  %s727_s0 = inlined_call_operand.vmem [shape: f32[8,128], index: 0, kind: input, shape index: {}]   ;;  %s728_s4 = inlined_call_operand.vmem [shape: f32[1,128], index: 4, kind: input, shape index: {}]   ;;  %s729_s5 = inlined_call_operand.vmem [shape: bf16[128,256], index: 5, kind: input, shape index: {}]   ;;  %s730_s6 = inlined_call_operand.vmem [shape: f32[1,256], index: 6, kind: input, shape index: {}]   ;;  %s731_s7 = inlined_call_operand.vmem [shape: f32[8,256], index: 7, kind: output, shape index: {}]  }
   0x1   :  { %v483_v0 = vld [vmem:[%s724_s1 + $0x38] sm:$0xff]  ;;  %v482_v1 = vld [vmem:[%s724_s1 + $0x30] sm:$0xff]  ;;  %v481_v4 = vld [vmem:[%s724_s1 + $0x28] sm:$0xff] }
   0x2   :  { %96 = vmatpush.bf16.msra.mxu0 %v483_v0  ;;  %v491_v2 = vld [vmem:[%s725_s3 + $0x38] sm:$0xff]  ;;  %v490_v3 = vld [vmem:[%s725_s3 + $0x30] sm:$0xff]  ;;  %v489_v5 = vld [vmem:[%s725_s3 + $0x28] sm:$0xff] }
   0x3   :  { %179 = vmatpush.bf16.msra.mxu1 %v491_v2  ;;  %v480_v6 = vld [vmem:[%s724_s1 + $0x20] sm:$0xff]  ;;  %v479_v8 = vld [vmem:[%s724_s1 + $0x18] sm:$0xff]  ;;  %v478_v10 = vld [vmem:[%s724_s1 + $0x10] sm:$0xff] }
   0x4   :  { %v488_v7 = vld [vmem:[%s725_s3 + $0x20] sm:$0xff]  ;;  %v487_v9 = vld [vmem:[%s725_s3 + $0x18] sm:$0xff]  ;;  %v477_v11 = vld [vmem:[%s724_s1 + $0x8] sm:$0xff] }
   0x5   :  { %v476_v12 = vld [vmem:[%s724_s1] sm:$0xff]  ;;  %v486_v15 = vld [vmem:[%s725_s3 + $0x10] sm:$0xff]  ;;  %v485_v16 = vld [vmem:[%s725_s3 + $0x8] sm:$0xff] }
   0x6   :  { %97 = vmatpush.bf16.msra.mxu0 %v482_v1  ;;  %v26_v13 = vld [vmem:[%s727_s0] sm:$0xff]  ;;  %v470_v18 = vld [vmem:[%s729_s5 + $0x70] sm:$0xf]  ;;  %v507_v19 = vld [vmem:[%s729_s5 + $0x74] sm:$0xf0] }
   0x7   :  { %180 = vmatpush.bf16.msra.mxu1 %v490_v3  ;;  %v27_v14 = vpack.c.bf16 %v26_v13, %v26_v13  ;;  %v484_v17 = vld [vmem:[%s725_s3] sm:$0xff]  ;;  %v506_v20 = vld [vmem:[%s729_s5 + $0x74] sm:$0xf]  ;;  %v471_v21 = vor.u32 %v507_v19, %v470_v18  ;;  %v472_v22 = vld [vmem:[%s729_s5 + $0x78] sm:$0xf0] }
   0x8   :  { %v462_v23 = vld [vmem:[%s729_s5 + $0x60] sm:$0xf]  ;;  %v505_v24 = vld [vmem:[%s729_s5 + $0x64] sm:$0xf0]  ;;  %v475_v25 = vor.u32 %v506_v20, %v472_v22  ;;  %v504_v26 = vld [vmem:[%s729_s5 + $0x64] sm:$0xf] }
   0x9   :  { %v464_v27 = vld [vmem:[%s729_s5 + $0x68] sm:$0xf0]  ;;  %296 = vmatpush.bf16.msra.mxu2 %v471_v21  ;;  %v463_v28 = vor.u32 %v505_v24, %v462_v23  ;;  %v454_v30 = vld [vmem:[%s729_s5 + $0x50] sm:$0xf]  ;;  %v503_v31 = vld [vmem:[%s729_s5 + $0x54] sm:$0xf0] }
   0xa   :  { %98 = vmatpush.bf16.msra.mxu0 %v481_v4  ;;  %309 = vmatpush.bf16.msra.mxu3 %v475_v25  ;;  %v467_v29 = vor.u32 %v504_v26, %v464_v27  ;;  %v502_v32 = vld [vmem:[%s729_s5 + $0x54] sm:$0xf]  ;;  %v456_v33 = vld [vmem:[%s729_s5 + $0x58] sm:$0xf0]  ;;  %v455_v34 = vor.u32 %v503_v31, %v454_v30  ;;  %v446_v36 = vld [vmem:[%s729_s5 + $0x40] sm:$0xf] }
   0xb   :  { %181 = vmatpush.bf16.msra.mxu1 %v489_v5  ;;  %v459_v35 = vor.u32 %v502_v32, %v456_v33  ;;  %v501_v37 = vld [vmem:[%s729_s5 + $0x44] sm:$0xf0]  ;;  %v500_v38 = vld [vmem:[%s729_s5 + $0x44] sm:$0xf]  ;;  %v448_v39 = vld [vmem:[%s729_s5 + $0x48] sm:$0xf0] }
   0xc   :  { %v447_v40 = vor.u32 %v501_v37, %v446_v36  ;;  %v451_v41 = vor.u32 %v500_v38, %v448_v39  ;;  %v438_v42 = vld [vmem:[%s729_s5 + $0x30] sm:$0xf]  ;;  %v499_v43 = vld [vmem:[%s729_s5 + $0x34] sm:$0xf0]  ;;  %v498_v44 = vld [vmem:[%s729_s5 + $0x34] sm:$0xf] }
   0xd   :  { %297 = vmatpush.bf16.msra.mxu2 %v463_v28  ;;  %v440_v45 = vld [vmem:[%s729_s5 + $0x38] sm:$0xf0]  ;;  %v439_v46 = vor.u32 %v499_v43, %v438_v42  ;;  %v508_v48 = vld [vmem:[%s726_s2] ss:$0 sm:$0xff]  ;;  %v497_v55 = vld [vmem:[%s729_s5 + $0x24] sm:$0xf0] }
   0xe   :  { %99 = vmatpush.bf16.msra.mxu0 %v480_v6  ;;  %310 = vmatpush.bf16.msra.mxu3 %v467_v29  ;;  %v443_v47 = vor.u32 %v498_v44, %v440_v45  ;;  %v430_v54 = vld [vmem:[%s729_s5 + $0x20] sm:$0xf]  ;;  %v496_v56 = vld [vmem:[%s729_s5 + $0x24] sm:$0xf]  ;;  %v432_v58 = vld [vmem:[%s729_s5 + $0x28] sm:$0xf0] }
   0xf   :  { %182 = vmatpush.bf16.msra.mxu1 %v488_v7  ;;  %v431_v57 = vor.u32 %v497_v55, %v430_v54  ;;  %v435_v59 = vor.u32 %v496_v56, %v432_v58  ;;  %v422_v60 = vld [vmem:[%s729_s5 + $0x10] sm:$0xf]  ;;  %v495_v61 = vld [vmem:[%s729_s5 + $0x14] sm:$0xf0]  ;;  %v494_v62 = vld [vmem:[%s729_s5 + $0x14] sm:$0xf] }
  0x10   :  { %v423_v63 = vor.u32 %v495_v61, %v422_v60  ;;  %v424_v0 = vld [vmem:[%s729_s5 + $0x18] sm:$0xf0]  ;;  %v414_v2 = vld [vmem:[%s729_s5] sm:$0xf]  ;;  %v493_v3 = vld [vmem:[%s729_s5 + $0x4] sm:$0xf0] }
  0x11   :  { %298 = vmatpush.bf16.msra.mxu2 %v455_v34  ;;  %v427_v1 = vor.u32 %v494_v62, %v424_v0  ;;  %v492_v4 = vld [vmem:[%s729_s5 + $0x4] sm:$0xf]  ;;  %v415_v5 = vor.u32 %v493_v3, %v414_v2  ;;  %v416_v6 = vld [vmem:[%s729_s5 + $0x8] sm:$0xf0] }
  0x12   :  { %100 = vmatpush.bf16.msra.mxu0 %v479_v8  ;;  %311 = vmatpush.bf16.msra.mxu3 %v459_v35  ;;  %v419_v7 = vor.u32 %v492_v4, %v416_v6  ;;  %v509_v8 = vld [vmem:[%s728_s4] ss:$0 sm:$0xff] }
  0x13   :  { %183 = vmatpush.bf16.msra.mxu1 %v487_v9 }
  0x15   :  { %299 = vmatpush.bf16.msra.mxu2 %v447_v40 }
  0x16   :  { %101 = vmatpush.bf16.msra.mxu0 %v478_v10  ;;  %312 = vmatpush.bf16.msra.mxu3 %v451_v41 }
  0x17   :  { %184 = vmatpush.bf16.msra.mxu1 %v486_v15 }
  0x19   :  { %300 = vmatpush.bf16.msra.mxu2 %v439_v46 }
  0x1a   :  { %102 = vmatpush.bf16.msra.mxu0 %v477_v11  ;;  %313 = vmatpush.bf16.msra.mxu3 %v443_v47 }
  0x1b   :  { %185 = vmatpush.bf16.msra.mxu1 %v485_v16 }
  0x1d   :  { %301 = vmatpush.bf16.msra.mxu2 %v431_v57 }
  0x1e   :  { %103 = vmatpush.bf16.msra.mxu0 %v476_v12  ;;  %314 = vmatpush.bf16.msra.mxu3 %v435_v59 }
  0x1f   :  { %186 = vmatpush.bf16.msra.mxu1 %v484_v17 }
  0x21   :  { %104 = vmatmul.bf16.vlgmr.msra.gmra.mxu0 %v27_v14  ;;  %302 = vmatpush.bf16.msra.mxu2 %v423_v63  ;;  %v210_v14 = vld [vmem:[%s730_s6] sm:$0x3] }
  0x22   :  { %315 = vmatpush.bf16.msra.mxu3 %v427_v1  ;;  %v212_v15 = vperm.slane %v210_v14, 0  ;;  %v213_v16 = vperm.slane %v210_v14, 1 }
  0x25   :  { %303 = vmatpush.bf16.msra.mxu2 %v415_v5 }
  0x26   :  { %316 = vmatpush.bf16.msra.mxu3 %v419_v7 }
  0x9e   :  { %v105_v49 = vpop.f32.mrf.mxu0 }
  0x9f   :  { %v106_v50 = vadd.f32 %v508_v48, %v105_v49 }
  0xa1   :  { %510 = vtanh.f32 %v106_v50 }
  0xa6   :  { %v107_v51 = vpop.f32.mrf.mxu0 }
  0xa7   :  { %v511_v52 = vpop.eup %510 }
  0xa8   :  { %v110_v53 = vpack.c.bf16 %v511_v52, %v511_v52 }
  0xaa   :  { %187 = vmatmul.bf16.vlgmr.msra.gmra.mxu1 %v110_v53 }
 0x127   :  { %v188_v9 = vpop.f32.mrf.mxu1 }
 0x128   :  { %v189_v10 = vadd.f32 %v509_v8, %v188_v9 }
 0x12a   :  { %512 = vtanh.f32 %v189_v10 }
 0x12f   :  { %v190_v11 = vpop.f32.mrf.mxu1 }
 0x130   :  { %v513_v12 = vpop.eup %512 }
 0x131   :  { %v193_v13 = vpack.c.bf16 %v513_v12, %v513_v12 }
 0x133   :  { %304 = vmatmul.bf16.vlgmr.msra.gmra.mxu2 %v193_v13  ;;  %317 = vmatmul.bf16.vlgmr.msra.gmra.mxu3 %v193_v13 }
 0x1b6   :  { %v305_v17 = vpop.f32.mrf.mxu2  ;;  %v318_v18 = vpop.f32.mrf.mxu3 }
 0x1b7   :  { %v306_v19 = vadd.f32 %v305_v17, %v212_v15  ;;  %v319_v20 = vadd.f32 %v318_v18, %v213_v16 }
 0x1b9   :  { %v324_v21 = vand.u32 2147483647, %v306_v19  ;;  %v325_v22 = vand.u32 2147483647, %v319_v20  ;;  %v322_v35 = vmax.f32 %v306_v19, 0.0  ;;  %v323_v37 = vmax.f32 %v319_v20, 0.0 }
 0x1bb   :  { %v326_v23 = vsub.f32 0.0, %v324_v21  ;;  %v327_v24 = vsub.f32 0.0, %v325_v22 }
 0x1bd   :  { %v328_v25 = vmul.f32 1.442695, %v326_v23  ;;  %v330_v26 = vmul.f32 1.442695, %v327_v24 }
 0x1be   :  { %v307_v27 = vpop.f32.mrf.mxu2  ;;  %v320_v28 = vpop.f32.mrf.mxu3 }
 0x1bf   :  { %514 = vpow2.f32 %v328_v25 }
 0x1c0   :  { %516 = vpow2.f32 %v330_v26 }
 0x1c5   :  { %v515_v29 = vpop.eup %514 }
 0x1c6   :  { %v517_v30 = vpop.eup %516  ;;  %v332_v31 = vadd.f32 1.0, %v515_v29 }
 0x1c7   :  { %v333_v32 = vadd.f32 1.0, %v517_v30 }
 0x1c8   :  { %518 = vlog2.f32 %v332_v31 }
 0x1c9   :  { %520 = vlog2.f32 %v333_v32 }
 0x1ce   :  { %v519_v33 = vpop.eup %518 }
 0x1cf   :  { %v521_v34 = vpop.eup %520  ;;  %v335_v36 = vmul.f32 0.6931472, %v519_v33 }
 0x1d0   :  { %v337_v38 = vmul.f32 0.6931472, %v521_v34 }
 0x1d1   :  { %v338_v39 = vadd.f32 %v335_v36, %v322_v35 }
 0x1d2   :  { %v339_v40 = vadd.f32 %v337_v38, %v323_v37 }
 0x1d3   :  { %v340_v41 = vadd.f32 1.0, %v338_v39 }
 0x1d4   :  { %v341_v42 = vadd.f32 1.0, %v339_v40 }
 0x1d5   :  { %342 = vst [vmem:[%s731_s7] sm:$0xff] %v340_v41 }
 0x1d6   :  { %343 = vst [vmem:[%s731_s7 + $0x8] sm:$0xff] %v341_v42 }

</bundles_post_ra>
